<compile_context>
chip_gen: v6e
topology: v6e:2x2x1
jax: 0.10.0
libtpu: 0.0.40
codegen_flags: <defaults>
</compile_context>

<pallas_src>
import functools

import jax
import jax.numpy as jnp
from jax import lax
from jax.experimental import pallas as pl
from jax.experimental.pallas import tpu as pltpu


# ---------------------------------------------------------------------------
# small static helpers
# ---------------------------------------------------------------------------

def _round_up(x, m):
    return ((x + m - 1) // m) * m


def _pick_chunk(n, target, align=1):
    """Largest divisor of n that is <= target and a multiple of `align`."""
    for c in range(min(n, target), 0, -1):
        if n % c == 0 and c % align == 0:
            return c
    return n


# ---------------------------------------------------------------------------
# Pallas kernel 1: KD soft loss (tiny: B x num_classes, one grid point)
# ---------------------------------------------------------------------------

def _kd_soft_kernel(s_ref, t_ref, out_ref, *, tau):
    inv_tau = 1.0 / tau
    s = s_ref[...].astype(jnp.float32) * inv_tau
    t = t_ref[...].astype(jnp.float32) * inv_tau

    def log_softmax(x):
        m = jnp.max(x, axis=-1, keepdims=True)
        z = x - m
        return z - jnp.log(jnp.sum(jnp.exp(z), axis=-1, keepdims=True))

    ls = log_softmax(s)
    lt = log_softmax(t)
    # KL(log_softmax(t/tau) || log_softmax(s/tau)), batchmean over the GLOBAL
    # batch, log_target=True, scaled by tau^2 -- matches F.kl_div soft distill.
    kl_sum = jnp.sum(jnp.exp(lt) * (lt - ls))
    out_ref[0, 0] = kl_sum * jnp.float32(tau * tau / s.shape[0])


def kd_soft_loss(student_logits, teacher_logits, *, tau):
    B, NC = student_logits.shape
    out = pl.pallas_call(
        functools.partial(_kd_soft_kernel, tau=tau),
        out_shape=jax.ShapeDtypeStruct((1, 1), jnp.float32),
        grid_spec=pltpu.PrefetchScalarGridSpec(
            num_scalar_prefetch=0,
            grid=(1,),
            in_specs=[pl.BlockSpec((B, NC), lambda i: (0, 0)),
                      pl.BlockSpec((B, NC), lambda i: (0, 0))],
            out_specs=pl.BlockSpec((1, 1), lambda i: (0, 0),
                                   memory_space=pltpu.SMEM)),
        compiler_params=pltpu.CompilerParams(
            dimension_semantics=("arbitrary",)),
        cost_estimate=pl.CostEstimate(flops=8 * B * NC,
                                      transcendentals=2 * B * NC,
                                      bytes_accessed=8 * B * NC + 4),
    )(student_logits, teacher_logits)
    return out[0, 0]


# ---------------------------------------------------------------------------
# Pallas kernel 2: per-layer manifold-distillation losses, grid over layers
# ---------------------------------------------------------------------------

def _mf_layer_kernel(fs_ref, ft_ref, fsr_ref, ftr_ref, out_ref, acc_ref, *,
                     cb, cp, inv_patch, inv_sample, inv_rand):
    _, B, Pp, C = fs_ref.shape           # bf16 feature tile for this layer

    # per-step scratch accumulators (reset every grid step; no cross-step use,
    # so the layer axis can be "parallel")
    acc_ref[0] = jnp.float32(0.0)
    acc_ref[1] = jnp.float32(0.0)
    acc_ref[2] = jnp.float32(0.0)

    def nrm32(x):  # F.normalize(x, dim=-1) (p=2) in f32 via EUP rsqrt
        xf = x.astype(jnp.float32)
        ss = jnp.sum(xf * xf, axis=-1, keepdims=True)
        return xf * lax.rsqrt(jnp.maximum(ss, 1e-24))

    # ---- patch-wise Gram, chunked over batch: live intermediates [cb,Pp,Pp]
    def body_b(i, carry):
        i0 = pl.multiple_of(i * cb, cb)
        fs_c = nrm32(fs_ref[0, pl.ds(i0, cb), :, :]).astype(jnp.bfloat16)
        ft_c = nrm32(ft_ref[0, pl.ds(i0, cb), :, :]).astype(jnp.bfloat16)
        ms = jnp.einsum('bpc,bqc->bpq', fs_c, fs_c,
                        preferred_element_type=jnp.float32)
        mt = jnp.einsum('bpc,bqc->bpq', ft_c, ft_c,
                        preferred_element_type=jnp.float32)
        d = mt - ms
        acc_ref[0] = acc_ref[0] + jnp.sum(d * d)
        return carry
    lax.fori_loop(0, B // cb, body_b, 0)

    # ---- sample-wise Gram, chunked over patches: live intermediates [cp,B,B]
    # (the sample Gram needs the full batch per patch -> chunk over p, never b;
    #  only the small per-chunk slice is relaid out before the MXU matmul)
    def body_p(j, carry):
        j0 = pl.multiple_of(j * cp, cp)
        fs_c = jnp.transpose(nrm32(fs_ref[0, :, pl.ds(j0, cp), :]),
                             (1, 0, 2)).astype(jnp.bfloat16)    # [cp, B, C]
        ft_c = jnp.transpose(nrm32(ft_ref[0, :, pl.ds(j0, cp), :]),
                             (1, 0, 2)).astype(jnp.bfloat16)
        ms = jnp.einsum('pic,pjc->pij', fs_c, fs_c,
                        preferred_element_type=jnp.float32)
        mt = jnp.einsum('pic,pjc->pij', ft_c, ft_c,
                        preferred_element_type=jnp.float32)
        d = mt - ms
        acc_ref[1] = acc_ref[1] + jnp.sum(d * d)
        return carry
    lax.fori_loop(0, Pp // cp, body_p, 0)

    # ---- random-subset Gram: [Kp, Kp]
    fsr = nrm32(fsr_ref[0]).astype(jnp.bfloat16)
    ftr = nrm32(ftr_ref[0]).astype(jnp.bfloat16)
    ms = jnp.dot(fsr, fsr.T, preferred_element_type=jnp.float32)
    mt = jnp.dot(ftr, ftr.T, preferred_element_type=jnp.float32)
    d = mt - ms
    acc_ref[2] = acc_ref[2] + jnp.sum(d * d)

    # per-layer means: divisors use the UNPADDED sizes (padded rows normalize
    # to exact zeros, so they contribute 0 to the sums above).
    out_ref[0, 0] = acc_ref[0] * jnp.float32(inv_patch)    # loss_mf_patch
    out_ref[0, 1] = acc_ref[1] * jnp.float32(inv_sample)   # loss_mf_sample
    out_ref[0, 2] = acc_ref[2] * jnp.float32(inv_rand)     # loss_mf_rand


def mf_layer_losses(fs_stack, ft_stack, fsr_stack, ftr_stack, *, p_true, k_true):
    """Returns [L, 3] per-layer (patch, sample, rand) manifold losses."""
    L, B, Pp, C = fs_stack.shape
    Kp = fsr_stack.shape[1]

    cb = _pick_chunk(B, 8)               # batch chunk for the patch-wise Gram
    cp = _pick_chunk(Pp, 32, align=8)    # patch chunk for the sample-wise Gram

    inv_patch = 1.0 / (B * p_true * p_true)
    inv_sample = 1.0 / (p_true * B * B)
    inv_rand = 1.0 / (k_true * k_true)

    flops = L * (4 * B * Pp * Pp * C + 4 * Pp * B * B * C + 4 * Kp * Kp * C)
    transcendentals = L * (4 * B * Pp + 2 * Kp)
    bytes_accessed = 2 * L * (2 * B * Pp * C + 2 * Kp * C) + L * 3 * 4  # bf16 in

    out = pl.pallas_call(
        functools.partial(_mf_layer_kernel, cb=cb, cp=cp, inv_patch=inv_patch,
                          inv_sample=inv_sample, inv_rand=inv_rand),
        out_shape=jax.ShapeDtypeStruct((L, 3), jnp.float32),
        grid_spec=pltpu.PrefetchScalarGridSpec(
            num_scalar_prefetch=0,
            grid=(L,),
            in_specs=[
                pl.BlockSpec((1, B, Pp, C), lambda l: (l, 0, 0, 0)),  # F_s tile
                pl.BlockSpec((1, B, Pp, C), lambda l: (l, 0, 0, 0)),  # F_t tile
                pl.BlockSpec((1, Kp, C), lambda l: (l, 0, 0)),        # F_s rand rows
                pl.BlockSpec((1, Kp, C), lambda l: (l, 0, 0)),        # F_t rand rows
            ],
            out_specs=pl.BlockSpec((1, 3), lambda l: (l, 0),
                                   memory_space=pltpu.SMEM),
            scratch_shapes=[pltpu.SMEM((3,), jnp.float32)],
        ),
        compiler_params=pltpu.CompilerParams(
            # Per-layer losses are independent -> "parallel" lets v7x's two
            # TensorCores split the L axis (plain serial loop on v5e/v6e).
            dimension_semantics=("parallel",),
            # TODO(synk): re-derive per generation/shape; on v7x (64 MiB VMEM)
            # keep bf16 tiles + chunk intermediates under ~48 MiB or switch the
            # sample term to the CxC trace identity.
            vmem_limit_bytes=64 * 1024 * 1024),
        cost_estimate=pl.CostEstimate(flops=flops,
                                      transcendentals=transcendentals,
                                      bytes_accessed=bytes_accessed),
    )(fs_stack, ft_stack, fsr_stack, ftr_stack)
    return out


# ---------------------------------------------------------------------------
# Plain-JAX glue mirroring the PyTorch helpers
# ---------------------------------------------------------------------------

def merge(x, max_patch_num=196):
    # TODO(synk): forward() calls mf_loss with max_patch_num=0, so this path is unused.
    B, P, C = x.shape
    if P <= max_patch_num:
        return x
    n = int(P ** 0.5)
    m = int(max_patch_num ** 0.5)
    merge_num = n // m
    x = x.reshape(B, m, merge_num, m, merge_num, C)
    return jnp.transpose(x, (0, 1, 3, 2, 4, 5)).reshape(B, m * m, -1)


def _prep_mf_inputs(block_outs_s, block_outs_t, layer_ids_s, layer_ids_t, K, rng_key):
    """Stack selected layers on a leading axis, pre-gather the K random rows
    (row-wise normalization commutes with the gather, and is done in-kernel),
    zero-pad P/K to sublane/MXU-friendly sizes, and cast to bf16."""
    extra_tk_num = block_outs_s[0].shape[1] - block_outs_t[0].shape[1]
    keys = jax.random.split(rng_key, len(layer_ids_s))
    fs_list, ft_list, fsr_list, ftr_list = [], [], [], []
    P_true = K_true = None
    for key, id_s, id_t in zip(keys, layer_ids_s, layer_ids_t):
        F_s = block_outs_s[id_s][:, extra_tk_num:, :]
        F_t = block_outs_t[id_t]
        B, P, C = F_s.shape
        P_true = P
        K_true = min(K, B * P)
        sampler = jax.random.permutation(key, B * P)[:K_true]  # mirrors torch.randperm
        fs_list.append(F_s)
        ft_list.append(F_t)
        fsr_list.append(F_s.reshape(B * P, C)[sampler])
        ftr_list.append(F_t.reshape(B * P, C)[sampler])

    fs = jnp.stack(fs_list)
    ft = jnp.stack(ft_list)
    fsr = jnp.stack(fsr_list)
    ftr = jnp.stack(ftr_list)

    # MXU / sublane friendly zero-padding (divisors in the kernel use the
    # unpadded sizes; padded rows normalize to exact zeros).
    P_pad = _round_up(P_true, 128) if P_true >= 128 else _round_up(P_true, 8)
    K_pad = _round_up(K_true, 8)
    if P_pad != P_true:
        fs = jnp.pad(fs, ((0, 0), (0, 0), (0, P_pad - P_true), (0, 0)))
        ft = jnp.pad(ft, ((0, 0), (0, 0), (0, P_pad - P_true), (0, 0)))
    if K_pad != K_true:
        fsr = jnp.pad(fsr, ((0, 0), (0, K_pad - K_true), (0, 0)))
        ftr = jnp.pad(ftr, ((0, 0), (0, K_pad - K_true), (0, 0)))

    # bf16 residency: halves feature HBM traffic and VMEM footprint.
    to_bf16 = lambda x: x.astype(jnp.bfloat16)
    return to_bf16(fs), to_bf16(ft), to_bf16(fsr), to_bf16(ftr), P_true, K_true


def distill_losses(student_logits, teacher_logits, fs_stack, ft_stack,
                   fsr_stack, ftr_stack, *, tau, w_patch, w_sample, w_rand,
                   p_true, k_true):
    # TODO(synk): forward-only; training requires a custom_vjp backward kernel.
    kd = kd_soft_loss(student_logits, teacher_logits, tau=tau)
    per_layer = mf_layer_losses(fs_stack, ft_stack, fsr_stack, ftr_stack,
                                p_true=p_true, k_true=k_true)      # [L, 3]
    layer_mean = jnp.mean(per_layer, axis=0)                       # mean over layers
    loss_mf_patch = w_patch * layer_mean[0]
    loss_mf_sample = w_sample * layer_mean[1]
    loss_mf_rand = w_rand * layer_mean[2]
    return kd, loss_mf_sample, loss_mf_patch, loss_mf_rand


class DistillationLoss:
    def __init__(self, base_criterion, teacher_model):
        self.base_criterion = base_criterion
        self.teacher_model = teacher_model
        self.distillation_type = 'soft'
        self.tau = 0.2
        self.layer_ids_s = [0, 1, 2, 3, 20, 21, 22, 23]
        self.layer_ids_t = [0, 1, 2, 3, 20, 21, 22, 23]
        self.alpha = 1.0
        self.beta = 0.1
        self.w_sample = 0.1
        self.w_patch = 4
        self.w_rand = 0.2
        self.K = 192

    def __call__(self, inputs, outputs, labels, *, rng_key):
        block_outs_s = outputs[1]
        if isinstance(outputs[0], (tuple, list)):
            outputs_main, outputs_kd = outputs[0]
        else:
            outputs_main = outputs_kd = outputs[0]

        base_loss = self.base_criterion(outputs_main, labels)

        # teacher forward under no_grad
        teacher_outputs, block_outs_t = self.teacher_model(inputs)
        teacher_outputs = jax.lax.stop_gradient(teacher_outputs)
        block_outs_t = [jax.lax.stop_gradient(b) for b in block_outs_t]

        if self.distillation_type != 'soft':
            # TODO(synk): 'hard' branch (CE on teacher argmax) never taken with these hyperparams.
            raise NotImplementedError

        fs_stack, ft_stack, fsr_stack, ftr_stack, p_true, k_true = _prep_mf_inputs(
            block_outs_s, block_outs_t, self.layer_ids_s, self.layer_ids_t,
            self.K, rng_key)

        (distillation_loss, loss_mf_sample, loss_mf_patch, loss_mf_rand) = \
            distill_losses(outputs_kd, teacher_outputs, fs_stack, ft_stack,
                           fsr_stack, ftr_stack, tau=self.tau,
                           w_patch=self.w_patch, w_sample=self.w_sample,
                           w_rand=self.w_rand, p_true=p_true, k_true=k_true)

        loss_base = (1 - self.alpha) * base_loss
        loss_dist = self.alpha * distillation_loss
        loss_mf_sample = self.beta * loss_mf_sample
        loss_mf_patch = self.beta * loss_mf_patch
        loss_mf_rand = self.beta * loss_mf_rand
        return (loss_base, loss_dist, loss_mf_sample, loss_mf_patch, loss_mf_rand)


# ---------------------------------------------------------------------------
# Deterministic synthetic teacher / base criterion (constructor-injected deps)
# ---------------------------------------------------------------------------

def make_teacher(key, img_shape, num_classes, embed_dim, num_layers, patch_size):
    _, Cin, H, W = img_shape
    ph, pw = H // patch_size, W // patch_size
    patch_dim = Cin * patch_size * patch_size
    keys = jax.random.split(key, num_layers + 1)
    w_cls = 0.02 * jax.random.normal(keys[0], (Cin * H * W, num_classes), jnp.float32)
    w_blocks = [0.02 * jax.random.normal(keys[i + 1], (patch_dim, embed_dim), jnp.float32)
                for i in range(num_layers)]

    def teacher(x):                      # x: NCHW
        B = x.shape[0]
        logits = x.reshape(B, -1) @ w_cls
        xp = x.reshape(B, Cin, ph, patch_size, pw, patch_size)
        xp = jnp.transpose(xp, (0, 2, 4, 1, 3, 5)).reshape(B, ph * pw, patch_dim)
        blocks = [xp @ wb for wb in w_blocks]          # list of [B, P_t, C]
        return logits, blocks

    return teacher


def base_criterion(logits, labels):      # standard cross-entropy (synthetic base loss)
    logp = jax.nn.log_softmax(logits, axis=-1)
    return -jnp.mean(jnp.take_along_axis(logp, labels[:, None], axis=1))


# ---------------------------------------------------------------------------

if __name__ == "__main__":
    key = jax.random.PRNGKey(0)
    k_in, k_logits, k_blocks, k_labels, k_teacher, k_sampler = jax.random.split(key, 6)

    B, Cin, H, W = 2, 3, 16, 16
    num_classes = 16
    embed_dim = 32
    num_layers = 24
    patch = 4
    P_t = (H // patch) * (W // patch)    # 16 teacher patches
    P_s = P_t + 2                        # student has 2 extra (cls/dist) tokens

    inputs = jax.random.normal(k_in, (B, Cin, H, W), jnp.float32)
    labels = jax.random.randint(k_labels, (B,), 0, num_classes)
    student_logits = jax.random.normal(k_logits, (B, num_classes), jnp.float32)
    bkeys = jax.random.split(k_blocks, num_layers)
    block_outs_s = [jax.random.normal(k, (B, P_s, embed_dim), jnp.float32) for k in bkeys]
    outputs = (student_logits, block_outs_s)

    teacher = make_teacher(k_teacher, (B, Cin, H, W), num_classes, embed_dim,
                           num_layers, patch)

    criterion = DistillationLoss(base_criterion, teacher)
    losses = criterion(inputs, outputs, labels, rng_key=k_sampler)
    losses = jax.block_until_ready(losses)
    print("KERNEL_OK")
</pallas_src>

<mosaic_0001>
module attributes {stable_mosaic.version = 11 : i64} {
  func.func @_kd_soft_kernel(%arg0: i32, %arg1: memref<2x16xf32, #tpu.memory_space<vmem>>, %arg2: memref<2x16xf32, #tpu.memory_space<vmem>>, %arg3: memref<1x1xf32, #tpu.memory_space<smem>>) attributes {dimension_semantics = [#tpu.dimension_semantics<arbitrary>], iteration_bounds = array<i64: 1>, scalar_prefetch = 0 : i64, scratch_operands = 0 : i64, tpu.core_type = #tpu.core_type<tc>, window_params = [{pipeline_mode = #tpu.pipeline_mode<synchronous>, transform_indices = @transform_0, window_bounds = array<i64: 2, 16>}, {pipeline_mode = #tpu.pipeline_mode<synchronous>, transform_indices = @transform_1, window_bounds = array<i64: 2, 16>}, {transform_indices = @transform_2, window_bounds = array<i64: 1, 1>}]} {
    %c0 = arith.constant 0 : index
    %c0_0 = arith.constant 0 : index
    %0 = vector.load %arg1[%c0, %c0_0] : memref<2x16xf32, #tpu.memory_space<vmem>>, vector<2x16xf32>
    %cst = arith.constant 5.000000e+00 : f32
    %1 = vector.broadcast %cst : f32 to vector<2x16xf32>
    %2 = arith.mulf %0, %1 : vector<2x16xf32>
    %c0_1 = arith.constant 0 : index
    %c0_2 = arith.constant 0 : index
    %3 = vector.load %arg2[%c0_1, %c0_2] : memref<2x16xf32, #tpu.memory_space<vmem>>, vector<2x16xf32>
    %cst_3 = arith.constant 5.000000e+00 : f32
    %4 = vector.broadcast %cst_3 : f32 to vector<2x16xf32>
    %5 = arith.mulf %3, %4 : vector<2x16xf32>
    %cst_4 = arith.constant dense<0xFF800000> : vector<2xf32>
    %6 = vector.multi_reduction <maximumf>, %2, %cst_4 [1] : vector<2x16xf32> to vector<2xf32>
    %7 = vector.shape_cast %6 : vector<2xf32> to vector<2x1xf32>
    %8 = vector.broadcast %7 : vector<2x1xf32> to vector<2x16xf32>
    %9 = arith.subf %2, %8 : vector<2x16xf32>
    %10 = math.exp %9 : vector<2x16xf32>
    %cst_5 = arith.constant dense<0.000000e+00> : vector<2xf32>
    %11 = vector.multi_reduction <add>, %10, %cst_5 [1] : vector<2x16xf32> to vector<2xf32>
    %12 = vector.shape_cast %11 : vector<2xf32> to vector<2x1xf32>
    %13 = math.log %12 : vector<2x1xf32>
    %14 = vector.broadcast %13 : vector<2x1xf32> to vector<2x16xf32>
    %15 = arith.subf %9, %14 : vector<2x16xf32>
    %cst_6 = arith.constant dense<0xFF800000> : vector<2xf32>
    %16 = vector.multi_reduction <maximumf>, %5, %cst_6 [1] : vector<2x16xf32> to vector<2xf32>
    %17 = vector.shape_cast %16 : vector<2xf32> to vector<2x1xf32>
    %18 = vector.broadcast %17 : vector<2x1xf32> to vector<2x16xf32>
    %19 = arith.subf %5, %18 : vector<2x16xf32>
    %20 = math.exp %19 : vector<2x16xf32>
    %cst_7 = arith.constant dense<0.000000e+00> : vector<2xf32>
    %21 = vector.multi_reduction <add>, %20, %cst_7 [1] : vector<2x16xf32> to vector<2xf32>
    %22 = vector.shape_cast %21 : vector<2xf32> to vector<2x1xf32>
    %23 = math.log %22 : vector<2x1xf32>
    %24 = vector.broadcast %23 : vector<2x1xf32> to vector<2x16xf32>
    %25 = arith.subf %19, %24 : vector<2x16xf32>
    %26 = math.exp %25 : vector<2x16xf32>
    %27 = arith.subf %25, %15 : vector<2x16xf32>
    %28 = arith.mulf %26, %27 : vector<2x16xf32>
    %29 = vector.shape_cast %28 : vector<2x16xf32> to vector<1x2x16xf32>
    %cst_8 = arith.constant dense<0.000000e+00> : vector<1xf32>
    %30 = vector.multi_reduction <add>, %29, %cst_8 [1, 2] : vector<1x2x16xf32> to vector<1xf32>
    %31 = vector.shape_cast %30 : vector<1xf32> to vector<1x1x1xf32>
    %32 = vector.extract %31[0, 0, 0] : f32 from vector<1x1x1xf32>
    %cst_9 = arith.constant 2.000000e-02 : f32
    %33 = arith.mulf %32, %cst_9 : f32
    %c0_10 = arith.constant 0 : index
    %c0_11 = arith.constant 0 : index
    %34 = memref.load %arg3[%c0_10, %c0_11] : memref<1x1xf32, #tpu.memory_space<smem>>
    memref.store %33, %arg3[%c0_10, %c0_11] : memref<1x1xf32, #tpu.memory_space<smem>>
    return
  }
  func.func @transform_0(%arg0: i32) -> (i32, i32) {
    %c0_i32 = arith.constant 0 : i32
    %c0_i32_0 = arith.constant 0 : i32
    %c0_i32_1 = arith.constant 0 : i32
    return %c0_i32, %c0_i32_0 : i32, i32
  }
  func.func @transform_1(%arg0: i32) -> (i32, i32) {
    %c0_i32 = arith.constant 0 : i32
    %c0_i32_0 = arith.constant 0 : i32
    %c0_i32_1 = arith.constant 0 : i32
    return %c0_i32, %c0_i32_0 : i32, i32
  }
  func.func @transform_2(%arg0: i32) -> (i32, i32) {
    %c0_i32 = arith.constant 0 : i32
    %c0_i32_0 = arith.constant 0 : i32
    %c0_i32_1 = arith.constant 0 : i32
    return %c0_i32, %c0_i32_0 : i32, i32
  }
}

</mosaic_0001>

<bundles_post_ra>
// kernel: tpu_custom_call.1
= control target key start
LH: loop header
LB: loop body
LE: loop exit
PB: predicated region body
PF: predicated region fallthrough
CT: control target
= control target key end

     0   :  { %7 = vsyncpa [#allocation3], 0  ;;  %s198_s0 = inlined_call_operand.hbm [shape: f32[2,16], index: 0, kind: input, shape index: {}]   ;;  %s199_s1 = inlined_call_operand.hbm [shape: f32[2,16], index: 1, kind: input, shape index: {}]   ;;  %s200_s2 = inlined_call_operand.hbm [shape: f32[1,1], index: 2, kind: output, shape index: {}]  }
   0x1   :  { %8 = vsyncpa [#allocation6], 0 }
   0x2   :  { %9 = vsyncpa [#allocation4], 0  ;;  %s166_s9 = smov [#allocation2]   ;;  %s167_s11 = smov [#allocation5]  }
   0x3   :  { %s16_s10 = sshll.u32 %s166_s9, 4  ;;  %s26_s12 = sshll.u32 %s167_s11, 4  ;;  %s17_s10 = int_to_ptr.vmem [resolvable:$true] %s16_s10  ;;  %s27_s12 = int_to_ptr.vmem [resolvable:$true] %s26_s12 }
   0x4   :  { %s120_s13 = scalar_lea.vmem %s17_s10, 32  ;;  %p125_p1 = scmp.lt.s32.totalorder %s17_s10, %s17_s10 }
   0x5   :  { %p121_p0 = scmp.ne.s32.totalorder %s17_s10, %s120_s13  ;;  %p126_p2 = scmp.lt.s32.totalorder %s120_s13, %s120_s13 }
   0x7   :  { %p127_p3 = por %p126_p2, %p125_p1 }
   0x9   :  { %p128_p4 = pnand %p127_p3, %p121_p0 }
   0xb   :  { %131 = shalt.err (!%p128_p4)
}
   0xc   :  { %19 = dma.hbm_to_vmem [thread:$0]  %s198_s0, 32, %s17_s10, [#allocation3]  }
   0xd   :  { %s140_s16 = scalar_lea.vmem %s27_s12, 32  ;;  %p145_p6 = scmp.lt.s32.totalorder %s27_s12, %s27_s12 }
   0xe   :  { %p141_p5 = scmp.ne.s32.totalorder %s27_s12, %s140_s16  ;;  %p146_p7 = scmp.lt.s32.totalorder %s140_s16, %s140_s16 }
  0x10   :  { %p147_p8 = por %p146_p7, %p145_p6 }
  0x12   :  { %p148_p9 = pnand %p147_p8, %p141_p5 }
  0x14   :  { %151 = shalt.err (!%p148_p9)
}
  0x15   :  { %29 = dma.hbm_to_vmem [thread:$0]  %s199_s1, 32, %s27_s12, [#allocation6]  }
  0x16   :  { %160 = dma.done.wait [#allocation3], 32  }
  0x17   :  { %161 = vsyncadd [#allocation3], 4294967264 }
  0x18   :  { %162 = dma.done.wait [#allocation6], 32  }
  0x19   :  { %163 = vsyncadd [#allocation6], 4294967264  ;;  %v38_v0 = vld [vmem:[#allocation5] sm:$0x3]  ;;  %vm40_vm0 = vcmask 123904   ;;  %s168_s19 = smov [#allocation7]  }
  0x1a   :  { %v36_v1 = vld [vmem:[#allocation2] sm:$0x3]  ;;  %v39_v2 = vmul.f32 5.0, %v38_v0 }
  0x1b   :  { %v37_v3 = vmul.f32 5.0, %v36_v1 }
  0x1c   :  { %v53_v4 = vsel %vm40_vm0, %v39_v2, -inf }
  0x1d   :  { %54 = vmax.xlane.f32.xlu0 %v53_v4  ;;  %v41_v5 = vsel %vm40_vm0, %v37_v3, -inf }
  0x21   :  { %42 = vmax.xlane.f32.xlu0 %v41_v5 }
  0xa6   :  { %v55_v6 = vpop.xlane.xlu0 %54 }
  0xa7   :  { %v56_v7 = vsub.f32 %v39_v2, %v55_v6 }
  0xa9   :  { %v57_v8 = vmul.f32 1.442695, %v56_v7 }
  0xaa   :  { %v43_v9 = vpop.xlane.xlu0 %42 }
  0xab   :  { %102 = vpow2.f32 %v57_v8  ;;  %v44_v10 = vsub.f32 %v37_v3, %v43_v9 }
  0xad   :  { %v45_v11 = vmul.f32 1.442695, %v44_v10 }
  0xaf   :  { %104 = vpow2.f32 %v45_v11 }
  0xb8   :  { %v103_v12 = vpop.eup %102 }
  0xb9   :  { %v59_v13 = vsel %vm40_vm0, %v103_v12, 0.0 }
  0xba   :  { %60 = vadd.xlane.f32.xlu1 %v59_v13 }
  0xbc   :  { %v105_v14 = vpop.eup %104 }
  0xbd   :  { %v47_v15 = vsel %vm40_vm0, %v105_v14, 0.0 }
  0xbe   :  { %48 = vadd.xlane.f32.xlu1 %v47_v15 }
 0x143   :  { %v61_v16 = vpop.xlane.xlu1 %60 }
 0x144   :  { %106 = vlog2.f32 %v61_v16 }
 0x147   :  { %v49_v17 = vpop.xlane.xlu1 %48 }
 0x148   :  { %108 = vlog2.f32 %v49_v17 }
 0x151   :  { %v107_v18 = vpop.eup %106 }
 0x152   :  { %v63_v19 = vmul.f32 0.6931472, %v107_v18 }
 0x154   :  { %v64_v20 = vsub.f32 %v56_v7, %v63_v19 }
 0x155   :  { %v109_v22 = vpop.eup %108 }
 0x156   :  { %v65_v21 = vmul.f32 1.442695, %v64_v20  ;;  %v51_v23 = vmul.f32 0.6931472, %v109_v22 }
 0x158   :  { %110 = vpow2.f32 %v65_v21  ;;  %v52_v24 = vsub.f32 %v44_v10, %v51_v23 }
 0x15a   :  { %v67_v25 = vsub.f32 %v64_v20, %v52_v24 }
 0x165   :  { %v111_v26 = vpop.eup %110 }
 0x166   :  { %v68_v27 = vmul.f32 %v111_v26, %v67_v25 }
 0x168   :  { %v69_v28 = vsel %vm40_vm0, %v68_v27, 0.0 }
 0x169   :  { %70 = vadd.xlane.f32.xlu0 %v69_v28 }
 0x1f2   :  { %v71_v29 = vpop.xlane.xlu0 %70 }
 0x1f3   :  { %v72_v30 = vrot.slane %v71_v29, 4 }
 0x1f5   :  { %v73_v31 = vadd.f32 %v72_v30, %v71_v29 }
 0x1f7   :  { %v74_v32 = vrot.slane %v73_v31, 2 }
 0x1f9   :  { %v75_v33 = vadd.f32 %v74_v32, %v73_v31 }
 0x1fb   :  { %v76_v34 = vrot.slane %v75_v33, 1 }
 0x1fd   :  { %v77_v35 = vadd.f32 %v76_v34, %v75_v33 }
 0x1ff   :  { %97 = vpush %v77_v35 }
 0x230   :  { %s98_s0 = spop %97 }
 0x231   :  { %s79_s1 = smul.f32 0.02, %s98_s0 }
 0x233   :  { %81 = sst [smem:[#allocation7]] %s79_s1 }
 0x234   :  { %89 = dma.smem_to_hbm %s168_s19, 16, %s200_s2, [#allocation4]  }
 0x235   :  { %164 = dma.done.wait [#allocation4], 16  }
 0x236   :  { %165 = vsyncadd [#allocation4], 4294967280 }
 0x237   :  { %93 = sfence }
 0x238   :  { %94 = vsyncpa [#allocation3], 1 }
 0x239   :  { %95 = vsyncpa [#allocation6], 1 }
 0x23a   :  { %96 = vsyncpa [#allocation4], 1 }

</bundles_post_ra>
